<compile_context>
chip_gen: v5e
topology: v5e:2x2
jax: 0.10.0
libtpu: 0.0.40
codegen_flags: <defaults>
</compile_context>

<pallas_src>
import functools

import jax
import jax.numpy as jnp
from jax.experimental import pallas as pl
from jax.experimental.pallas import tpu as pltpu


def _round_up(n, m):
    return ((n + m - 1) // m) * m


def _tpu_defaults():
    """Returns (vmem_capacity_bytes, hidden_lane_multiple)."""
    try:
        info = pltpu.get_tpu_info()
        vmem = int(info.vmem_capacity_bytes)
        ver = str(getattr(info, "chip_version", "")).lower()
        # v5-class MXU is 128 wide; v6e/v7x use 256-wide tiles.
        m_hid = 128 if "5" in ver else 256
        return vmem, m_hid
    except Exception:
        # Assume the smallest VMEM (v7x, 64 MiB); 256 is always a valid multiple.
        return 64 * 2**20, 256


def _ffn_kernel(x_ref, w1_ref, b1_ref, w2_ref, b2_ref, g_ref, bln_ref,
                o_ref, acc_ref, *, eps, d_valid):
    k = pl.program_id(1)
    nk = pl.num_programs(1)

    @pl.when(k == 0)
    def _():
        acc_ref[...] = jnp.zeros_like(acc_ref)

    x = x_ref[...]                                   # (tm, d_in_p), compute dtype
    b1 = b1_ref[...].astype(jnp.float32)             # (1, tk)

    # First pointwise conv chunk: MXU in native dtype, f32 accumulate, ReLU.
    h = jnp.dot(x, w1_ref[...], preferred_element_type=jnp.float32) + b1
    h = jnp.maximum(h, 0.0)                          # (tm, tk)

    # Second pointwise conv chunk, accumulated into the f32 scratch.
    acc_ref[...] += jnp.dot(h.astype(w2_ref.dtype), w2_ref[...],
                            preferred_element_type=jnp.float32)

    @pl.when(k == nk - 1)
    def _():
        b2 = b2_ref[...].astype(jnp.float32)
        gamma = g_ref[...].astype(jnp.float32)
        beta = bln_ref[...].astype(jnp.float32)

        # dropout (eval) == identity, then residual add.
        y = acc_ref[...] + b2 + x.astype(jnp.float32)   # (tm, d_in_p)

        d_pad = y.shape[-1]
        inv_d = jnp.float32(1.0 / d_valid)
        if d_valid == d_pad:
            mean = jnp.mean(y, axis=-1, keepdims=True)
            c = y - mean
            var = jnp.mean(c * c, axis=-1, keepdims=True)
        else:
            # Padded lanes of y are exactly zero (padded W2 columns, b2 and x
            # are zero), so no iota/where mask is needed.
            mean = jnp.sum(y, axis=-1, keepdims=True) * inv_d
            var = jnp.maximum(
                jnp.sum(y * y, axis=-1, keepdims=True) * inv_d - mean * mean,
                0.0)
            c = y - mean
        out = c * jax.lax.rsqrt(var + eps) * gamma + beta
        o_ref[...] = out.astype(o_ref.dtype)


def positionwise_feed_forward(x, w1, b1, w2, b2, gamma, beta, *, eps=1e-5,
                              compute_dtype=jnp.bfloat16, tm=None, tk=None):
    """y = LayerNorm(W2 @ relu(W1 @ x + b1) + b2 + x), token-parallel.

    x: (B, L, d_in).  w1: (d_in, d_hid) matmul form of Conv1d(d_in, d_hid, 1).
    w2: (d_hid, d_in).  compute_dtype is the MXU feed dtype (bf16 default);
    accumulation and LayerNorm are always f32; output keeps x.dtype.
    """
    B, L, d_in = x.shape
    d_hid = w1.shape[1]
    N = B * L
    out_dtype = x.dtype
    if compute_dtype is None:
        compute_dtype = x.dtype
    cdt = jnp.dtype(compute_dtype)
    cdt_isz = cdt.itemsize
    out_isz = jnp.dtype(out_dtype).itemsize

    vmem_cap, m_hid = _tpu_defaults()

    # Lane-dense feature layout.
    d_in_p = _round_up(d_in, 128)
    d_hid_p = _round_up(d_hid, m_hid)

    # --- token tile ---------------------------------------------------------
    if tm is None:
        # Keep >= 2 token steps so both v7x TensorCores get work and the
        # pipeline has something to overlap; bigger cap on 128 MiB chips.
        cap = 1024 if (vmem_cap >= 100 * 2**20 and d_hid_p <= 4096) else 512
        tm = max(8, min(cap, _round_up(pl.cdiv(N, 2), 8)))

    # --- hidden (K) tile, sized from the chip's VMEM ------------------------
    budget = int(0.70 * vmem_cap)

    def _fixed_bytes(tm_):
        return (2 * tm_ * d_in_p * (cdt_isz + out_isz)   # dbl-buffered x / out
                + tm_ * d_in_p * 4                        # f32 accumulator
                + 2 * tm_ * d_in_p * 4                    # f32 y / centered temps
                + 2 * 3 * d_in_p * 4                      # b2 / gamma / beta
                + (1 << 20))                              # slack
    def _per_tk_bytes(tm_):
        return (2 * 2 * d_in_p * cdt_isz                  # W1 + W2 chunks (dbl-buf)
                + 2 * cdt_isz                             # b1 chunk
                + tm_ * (4 + cdt_isz))                    # f32 h + recast copy

    if tk is None:
        while True:
            avail = budget - _fixed_bytes(tm)
            tk = (max(avail, 0) // _per_tk_bytes(tm)) // m_hid * m_hid
            if tk >= m_hid or tm <= 8:
                break
            tm = max(8, _round_up(tm // 2, 8))
        tk = int(max(m_hid, min(tk, d_hid_p)))
    else:
        tk = _round_up(min(int(tk), d_hid_p), m_hid)

    # Make d_hid_p an exact multiple of tk (padded hidden columns/rows are
    # zero, so extra chunks contribute nothing).
    if tk >= d_hid_p:
        tk = d_hid_p
    else:
        n_k = pl.cdiv(d_hid_p, tk)
        tk = _round_up(pl.cdiv(d_hid_p, n_k), m_hid)
        d_hid_p = n_k * tk

    n_pad = _round_up(N, tm)
    n_tok = n_pad // tm
    n_k = d_hid_p // tk

    footprint = _fixed_bytes(tm) + _per_tk_bytes(tm) * tk
    vmem_limit = int(min(int(0.92 * vmem_cap),
                         max(32 * 2**20, int(1.4 * footprint))))

    # --- pad / cast (skipped when already aligned) --------------------------
    x2 = x.reshape(N, d_in).astype(cdt)
    if n_pad != N or d_in_p != d_in:
        x2 = jnp.pad(x2, ((0, n_pad - N), (0, d_in_p - d_in)))

    def _pad2(a, r, c, dt):
        a = a.astype(dt)
        if a.shape == (r, c):
            return a
        return jnp.pad(a, ((0, r - a.shape[0]), (0, c - a.shape[1])))

    def _pad_vec(a, c):
        a = a.reshape(1, -1)
        if a.shape[1] == c:
            return a
        return jnp.pad(a, ((0, 0), (0, c - a.shape[1])))

    w1p = _pad2(w1, d_in_p, d_hid_p, cdt)
    w2p = _pad2(w2, d_hid_p, d_in_p, cdt)
    b1p = _pad_vec(b1, d_hid_p)
    b2p = _pad_vec(b2, d_in_p)
    gp = _pad_vec(gamma, d_in_p)
    bp = _pad_vec(beta, d_in_p)

    w_bytes = 2 * d_in_p * d_hid_p * cdt_isz
    cost = pl.CostEstimate(
        flops=2 * 2 * n_pad * d_hid_p * d_in_p,          # two matmuls
        transcendentals=n_pad,                            # rsqrt per token row
        bytes_accessed=(n_pad * d_in_p * (cdt_isz + out_isz)
                        + w_bytes * (n_tok if n_k > 1 else 1)))

    out = pl.pallas_call(
        functools.partial(_ffn_kernel, eps=eps, d_valid=d_in),
        out_shape=jax.ShapeDtypeStruct((n_pad, d_in_p), out_dtype),
        grid_spec=pltpu.PrefetchScalarGridSpec(
            num_scalar_prefetch=0,
            grid=(n_tok, n_k),
            in_specs=[
                pl.BlockSpec((tm, d_in_p), lambda i, k: (i, 0)),     # x
                pl.BlockSpec((d_in_p, tk), lambda i, k: (0, k)),     # W1 chunk
                pl.BlockSpec((1, tk), lambda i, k: (0, k)),          # b1 chunk
                pl.BlockSpec((tk, d_in_p), lambda i, k: (k, 0)),     # W2 chunk
                pl.BlockSpec((1, d_in_p), lambda i, k: (0, 0)),      # b2
                pl.BlockSpec((1, d_in_p), lambda i, k: (0, 0)),      # gamma
                pl.BlockSpec((1, d_in_p), lambda i, k: (0, 0)),      # beta
            ],
            out_specs=pl.BlockSpec((tm, d_in_p), lambda i, k: (i, 0)),
            scratch_shapes=[pltpu.VMEM((tm, d_in_p), jnp.float32)],
        ),
        compiler_params=pltpu.CompilerParams(
            dimension_semantics=("parallel", "arbitrary"),
            vmem_limit_bytes=vmem_limit),
        cost_estimate=cost,
    )(x2, w1p, b1p, w2p, b2p, gp, bp)

    if n_pad == N and d_in_p == d_in:
        return out.reshape(B, L, d_in)
    return out[:N, :d_in].reshape(B, L, d_in)


def _reference(x, w1, b1, w2, b2, gamma, beta, eps=1e-5):
    h = jnp.maximum(jnp.einsum("bld,dh->blh", x, w1) + b1, 0.0)
    y = jnp.einsum("blh,hd->bld", h, w2) + b2 + x
    mean = jnp.mean(y, axis=-1, keepdims=True)
    var = jnp.mean((y - mean) ** 2, axis=-1, keepdims=True)
    return (y - mean) * jax.lax.rsqrt(var + eps) * gamma + beta


if __name__ == "__main__":
    B, L, d_in, d_hid = 2, 8, 32, 64

    key = jax.random.PRNGKey(0)
    kx, k1, kb1, k2, kb2 = jax.random.split(key, 5)

    x = jax.random.normal(kx, (B, L, d_in), dtype=jnp.float32)

    # Conv1d(d_in, d_hid, 1).weight has shape (d_hid, d_in, 1); we store its
    # matmul form (d_in, d_hid).  Deterministic synthetic init.
    w1 = jax.random.normal(k1, (d_in, d_hid), dtype=jnp.float32) * 0.05
    b1 = jax.random.normal(kb1, (d_hid,), dtype=jnp.float32) * 0.05
    w2 = jax.random.normal(k2, (d_hid, d_in), dtype=jnp.float32) * 0.05
    b2 = jax.random.normal(kb2, (d_in,), dtype=jnp.float32) * 0.05
    gamma = jnp.ones((d_in,), dtype=jnp.float32)
    beta = jnp.zeros((d_in,), dtype=jnp.float32)

    ref = _reference(x, w1, b1, w2, b2, gamma, beta)

    # 1) exact f32 path (tight tolerance)
    out_f32 = positionwise_feed_forward(x, w1, b1, w2, b2, gamma, beta,
                                        compute_dtype=jnp.float32)
    out_f32 = jax.block_until_ready(out_f32)
    assert out_f32.shape == (B, L, d_in)
    assert jnp.allclose(out_f32, ref, atol=1e-4, rtol=1e-4)

    # 2) default bf16 MXU path (loose tolerance vs f32 reference)
    out_bf16 = positionwise_feed_forward(x, w1, b1, w2, b2, gamma, beta)
    out_bf16 = jax.block_until_ready(out_bf16)
    assert out_bf16.shape == (B, L, d_in)
    assert jnp.allclose(out_bf16, ref, atol=6e-2, rtol=6e-2)

    # 3) ragged token count (exercises token padding path), f32 exact
    x_r = jax.random.normal(kx, (1, 5, d_in), dtype=jnp.float32)
    out_r = positionwise_feed_forward(x_r, w1, b1, w2, b2, gamma, beta,
                                      compute_dtype=jnp.float32)
    out_r = jax.block_until_ready(out_r)
    ref_r = _reference(x_r, w1, b1, w2, b2, gamma, beta)
    assert jnp.allclose(out_r, ref_r, atol=1e-4, rtol=1e-4)

    print("KERNEL_OK")
</pallas_src>

<mosaic_0001>
module attributes {stable_mosaic.version = 11 : i64} {
  func.func @_ffn_kernel(%arg0: i32, %arg1: i32, %arg2: memref<8x128xf32, #tpu.memory_space<vmem>>, %arg3: memref<128x256xf32, #tpu.memory_space<vmem>>, %arg4: memref<1x256xf32, #tpu.memory_space<vmem>>, %arg5: memref<256x128xf32, #tpu.memory_space<vmem>>, %arg6: memref<1x128xf32, #tpu.memory_space<vmem>>, %arg7: memref<1x128xf32, #tpu.memory_space<vmem>>, %arg8: memref<1x128xf32, #tpu.memory_space<vmem>>, %arg9: memref<8x128xf32, #tpu.memory_space<vmem>>, %arg10: memref<8x128xf32, #tpu.memory_space<vmem>>) attributes {dimension_semantics = [#tpu.dimension_semantics<parallel>, #tpu.dimension_semantics<arbitrary>], iteration_bounds = array<i64: 2, 1>, scalar_prefetch = 0 : i64, scratch_operands = 1 : i64, tpu.core_type = #tpu.core_type<tc>, window_params = [{transform_indices = @transform_0, window_bounds = array<i64: 8, 128>}, {transform_indices = @transform_1, window_bounds = array<i64: 128, 256>}, {transform_indices = @transform_2, window_bounds = array<i64: 1, 256>}, {transform_indices = @transform_3, window_bounds = array<i64: 256, 128>}, {pipeline_mode = #tpu.pipeline_mode<synchronous>, transform_indices = @transform_4, window_bounds = array<i64: 1, 128>}, {pipeline_mode = #tpu.pipeline_mode<synchronous>, transform_indices = @transform_5, window_bounds = array<i64: 1, 128>}, {pipeline_mode = #tpu.pipeline_mode<synchronous>, transform_indices = @transform_6, window_bounds = array<i64: 1, 128>}, {transform_indices = @transform_7, window_bounds = array<i64: 8, 128>}]} {
    %c0_i32 = arith.constant 0 : i32
    %0 = arith.cmpi eq, %arg1, %c0_i32 : i32
    %1 = arith.extui %0 : i1 to i32
    %c0_i32_0 = arith.constant 0 : i32
    %2 = arith.cmpi ne, %1, %c0_i32_0 : i32
    scf.if %2 {
      %cst_16 = arith.constant 0.000000e+00 : f32
      %19 = vector.broadcast %cst_16 : f32 to vector<8x128xf32>
      %c0_17 = arith.constant 0 : index
      %c0_18 = arith.constant 0 : index
      %20 = vector.load %arg10[%c0_17, %c0_18] : memref<8x128xf32, #tpu.memory_space<vmem>>, vector<8x128xf32>
      tpu.vector_store %arg10[%c0_17, %c0_18], %19 {strides = array<i32>} : memref<8x128xf32, #tpu.memory_space<vmem>>, vector<8x128xf32>,
    } else {
    }
    %c0 = arith.constant 0 : index
    %c0_1 = arith.constant 0 : index
    %3 = vector.load %arg2[%c0, %c0_1] : memref<8x128xf32, #tpu.memory_space<vmem>>, vector<8x128xf32>
    %c0_2 = arith.constant 0 : index
    %c0_3 = arith.constant 0 : index
    %4 = vector.load %arg4[%c0_2, %c0_3] : memref<1x256xf32, #tpu.memory_space<vmem>>, vector<1x256xf32>
    %c0_4 = arith.constant 0 : index
    %c0_5 = arith.constant 0 : index
    %5 = vector.load %arg3[%c0_4, %c0_5] : memref<128x256xf32, #tpu.memory_space<vmem>>, vector<128x256xf32>
    %cst = arith.constant dense<0.000000e+00> : vector<8x256xf32>
    %6 = tpu.matmul %3, %5, %cst {dimension_numbers = #tpu.dot_dimension_numbers<[1], [0], [0], [1], [0, 0, 1, 1], [], []>} : vector<8x128xf32>, vector<128x256xf32>, vector<8x256xf32> -> vector<8x256xf32>
    %7 = vector.broadcast %4 : vector<1x256xf32> to vector<8x256xf32>
    %8 = arith.addf %6, %7 : vector<8x256xf32>
    %cst_6 = arith.constant 0.000000e+00 : f32
    %9 = vector.broadcast %cst_6 : f32 to vector<8x256xf32>
    %10 = arith.maximumf %8, %9 : vector<8x256xf32>
    %c0_7 = arith.constant 0 : index
    %c0_8 = arith.constant 0 : index
    %11 = vector.load %arg10[%c0_7, %c0_8] : memref<8x128xf32, #tpu.memory_space<vmem>>, vector<8x128xf32>
    %c0_9 = arith.constant 0 : index
    %c0_10 = arith.constant 0 : index
    %12 = vector.load %arg5[%c0_9, %c0_10] : memref<256x128xf32, #tpu.memory_space<vmem>>, vector<256x128xf32>
    %cst_11 = arith.constant dense<0.000000e+00> : vector<8x128xf32>
    %13 = tpu.matmul %10, %12, %cst_11 {dimension_numbers = #tpu.dot_dimension_numbers<[1], [0], [0], [1], [0, 0, 1, 1], [], []>} : vector<8x256xf32>, vector<256x128xf32>, vector<8x128xf32> -> vector<8x128xf32>
    %14 = arith.addf %11, %13 : vector<8x128xf32>
    %c0_12 = arith.constant 0 : index
    %c0_13 = arith.constant 0 : index
    %15 = vector.load %arg10[%c0_12, %c0_13] : memref<8x128xf32, #tpu.memory_space<vmem>>, vector<8x128xf32>
    tpu.vector_store %arg10[%c0_12, %c0_13], %14 {strides = array<i32>} : memref<8x128xf32, #tpu.memory_space<vmem>>, vector<8x128xf32>,
    %c0_i32_14 = arith.constant 0 : i32
    %16 = arith.cmpi eq, %arg1, %c0_i32_14 : i32
    %17 = arith.extui %16 : i1 to i32
    %c0_i32_15 = arith.constant 0 : i32
    %18 = arith.cmpi ne, %17, %c0_i32_15 : i32
    scf.if %18 {
      %c0_16 = arith.constant 0 : index
      %c0_17 = arith.constant 0 : index
      %19 = vector.load %arg6[%c0_16, %c0_17] : memref<1x128xf32, #tpu.memory_space<vmem>>, vector<1x128xf32>
      %c0_18 = arith.constant 0 : index
      %c0_19 = arith.constant 0 : index
      %20 = vector.load %arg7[%c0_18, %c0_19] : memref<1x128xf32, #tpu.memory_space<vmem>>, vector<1x128xf32>
      %c0_20 = arith.constant 0 : index
      %c0_21 = arith.constant 0 : index
      %21 = vector.load %arg8[%c0_20, %c0_21] : memref<1x128xf32, #tpu.memory_space<vmem>>, vector<1x128xf32>
      %c0_22 = arith.constant 0 : index
      %c0_23 = arith.constant 0 : index
      %22 = vector.load %arg10[%c0_22, %c0_23] : memref<8x128xf32, #tpu.memory_space<vmem>>, vector<8x128xf32>
      %23 = vector.broadcast %19 : vector<1x128xf32> to vector<8x128xf32>
      %24 = arith.addf %22, %23 : vector<8x128xf32>
      %25 = arith.addf %24, %3 : vector<8x128xf32>
      %cst_24 = arith.constant dense<0.000000e+00> : vector<8xf32>
      %26 = vector.multi_reduction <add>, %25, %cst_24 [1] : vector<8x128xf32> to vector<8xf32>
      %27 = vector.shape_cast %26 : vector<8xf32> to vector<8x1xf32>
      %cst_25 = arith.constant 3.125000e-02 : f32
      %28 = vector.broadcast %cst_25 : f32 to vector<8x1xf32>
      %29 = arith.mulf %27, %28 : vector<8x1xf32>
      %30 = arith.mulf %25, %25 : vector<8x128xf32>
      %cst_26 = arith.constant dense<0.000000e+00> : vector<8xf32>
      %31 = vector.multi_reduction <add>, %30, %cst_26 [1] : vector<8x128xf32> to vector<8xf32>
      %32 = vector.shape_cast %31 : vector<8xf32> to vector<8x1xf32>
      %cst_27 = arith.constant 3.125000e-02 : f32
      %33 = vector.broadcast %cst_27 : f32 to vector<8x1xf32>
      %34 = arith.mulf %32, %33 : vector<8x1xf32>
      %35 = arith.mulf %29, %29 : vector<8x1xf32>
      %36 = arith.subf %34, %35 : vector<8x1xf32>
      %cst_28 = arith.constant 0.000000e+00 : f32
      %37 = vector.broadcast %cst_28 : f32 to vector<8x1xf32>
      %38 = arith.maximumf %36, %37 : vector<8x1xf32>
      %39 = vector.broadcast %29 : vector<8x1xf32> to vector<8x128xf32>
      %40 = arith.subf %25, %39 : vector<8x128xf32>
      %cst_29 = arith.constant 9.99999974E-6 : f32
      %41 = vector.broadcast %cst_29 : f32 to vector<8x1xf32>
      %42 = arith.addf %38, %41 : vector<8x1xf32>
      %43 = math.rsqrt %42 : vector<8x1xf32>
      %44 = vector.broadcast %43 : vector<8x1xf32> to vector<8x128xf32>
      %45 = arith.mulf %40, %44 : vector<8x128xf32>
      %46 = vector.broadcast %20 : vector<1x128xf32> to vector<8x128xf32>
      %47 = arith.mulf %45, %46 : vector<8x128xf32>
      %48 = vector.broadcast %21 : vector<1x128xf32> to vector<8x128xf32>
      %49 = arith.addf %47, %48 : vector<8x128xf32>
      %c0_30 = arith.constant 0 : index
      %c0_31 = arith.constant 0 : index
      %50 = vector.load %arg9[%c0_30, %c0_31] : memref<8x128xf32, #tpu.memory_space<vmem>>, vector<8x128xf32>
      tpu.vector_store %arg9[%c0_30, %c0_31], %49 {strides = array<i32>} : memref<8x128xf32, #tpu.memory_space<vmem>>, vector<8x128xf32>,
    } else {
    }
    return
  }
  func.func @transform_0(%arg0: i32, %arg1: i32) -> (i32, i32) {
    %c0_i32 = arith.constant 0 : i32
    %c0_i32_0 = arith.constant 0 : i32
    return %arg0, %c0_i32 : i32, i32
  }
  func.func @transform_1(%arg0: i32, %arg1: i32) -> (i32, i32) {
    %c0_i32 = arith.constant 0 : i32
    %c0_i32_0 = arith.constant 0 : i32
    return %c0_i32, %arg1 : i32, i32
  }
  func.func @transform_2(%arg0: i32, %arg1: i32) -> (i32, i32) {
    %c0_i32 = arith.constant 0 : i32
    %c0_i32_0 = arith.constant 0 : i32
    return %c0_i32, %arg1 : i32, i32
  }
  func.func @transform_3(%arg0: i32, %arg1: i32) -> (i32, i32) {
    %c0_i32 = arith.constant 0 : i32
    %c0_i32_0 = arith.constant 0 : i32
    return %arg1, %c0_i32 : i32, i32
  }
  func.func @transform_4(%arg0: i32, %arg1: i32) -> (i32, i32) {
    %c0_i32 = arith.constant 0 : i32
    %c0_i32_0 = arith.constant 0 : i32
    %c0_i32_1 = arith.constant 0 : i32
    return %c0_i32, %c0_i32_0 : i32, i32
  }
  func.func @transform_5(%arg0: i32, %arg1: i32) -> (i32, i32) {
    %c0_i32 = arith.constant 0 : i32
    %c0_i32_0 = arith.constant 0 : i32
    %c0_i32_1 = arith.constant 0 : i32
    return %c0_i32, %c0_i32_0 : i32, i32
  }
  func.func @transform_6(%arg0: i32, %arg1: i32) -> (i32, i32) {
    %c0_i32 = arith.constant 0 : i32
    %c0_i32_0 = arith.constant 0 : i32
    %c0_i32_1 = arith.constant 0 : i32
    return %c0_i32, %c0_i32_0 : i32, i32
  }
  func.func @transform_7(%arg0: i32, %arg1: i32) -> (i32, i32) {
    %c0_i32 = arith.constant 0 : i32
    %c0_i32_0 = arith.constant 0 : i32
    return %arg0, %c0_i32 : i32, i32
  }
}

</mosaic_0001>

<bundles_post_ra>
// kernel: tpu_custom_call.1
= control target key start
LH: loop header
LB: loop body
LE: loop exit
PB: predicated region body
PF: predicated region fallthrough
CT: control target
= control target key end

     0   :  { %s1279_s0 = inlined_call_operand.hbm [shape: f32[16,128], index: 0, kind: input, shape index: {}]   ;;  %s1280_s1 = inlined_call_operand.hbm [shape: f32[128,256], index: 1, kind: input, shape index: {}]   ;;  %s1281_s2 = inlined_call_operand.hbm [shape: f32[1,256], index: 2, kind: input, shape index: {}]   ;;  %s1282_s3 = inlined_call_operand.hbm [shape: f32[256,128], index: 3, kind: input, shape index: {}]   ;;  %s1283_s4 = inlined_call_operand.vmem [shape: f32[1,128], index: 4, kind: input, shape index: {}]   ;;  %s1284_s5 = inlined_call_operand.vmem [shape: f32[1,128], index: 5, kind: input, shape index: {}]   ;;  %s1285_s6 = inlined_call_operand.vmem [shape: f32[1,128], index: 6, kind: input, shape index: {}]   ;;  %s1286_s7 = inlined_call_operand.hbm [shape: f32[16,128], index: 7, kind: output, shape index: {}]  }
   0x1   :  { %1287 = sst [smem:[#allocation16_spill]] %s1280_s1 }
   0x2   :  { %1288 = sst [smem:[#allocation17_spill]] %s1281_s2 }
   0x3   :  { %12 = vsyncpa [#allocation4], 0 }
   0x4   :  { %14 = vsyncpa [#allocation4 + $0x1], 0 }
   0x5   :  { %15 = vsyncpa [#allocation7], 0 }
   0x6   :  { %16 = vsyncpa [#allocation10], 0 }
   0x7   :  { %17 = vsyncpa [#allocation5], 0 }
   0x8   :  { %19 = vsyncpa [#allocation5 + $0x1], 0  ;;  %s1096_s24 = smov 0   ;;  %s1098_s25 = smov 0  }
   0x9   :  { %s1100_s26 = smov 0   ;;  %s1102_s27 = smov 0  }
   0xa   :  { %s1104_s28 = smov 0   ;;  %s1106_s29 = smov 0  }
   0xb LB: > { %s716_s30 = sadd.s32 4294967295, %s1047_s29   ;;  %p718_p0 = scmp.ge.s32.totalorder %s1047_s29, 1  ;;  %s1047_s29 = sphi %s1106_s29, %s25_s29   ;;  %s1043_s28 = sphi %s1104_s28, %s1302_s28   ;;  %s1039_s27 = sphi %s1102_s27, %s1301_s27   ;;  %s1035_s26 = sphi %s1100_s26, %s1300_s26   ;;  %s1031_s25 = sphi %s1098_s25, %s1299_s25   ;;  %s1027_s24 = sphi %s1096_s24, %s1298_s24  }
   0xc   : > { %p1130_p1 = scmp.eq.s32.totalorder %s716_s30, 0  ;;  %p235_p2 = scmp.lt.s32.totalorder %s1047_s29, 3 }
   0xd   : > { %s1290_s1 = sld [smem:[#allocation16_spill]]  ;;  %s1049_s13 = smov [#allocation6]  }
   0xe   : > { %p1138_p3 = pnand %p718_p0, %p235_p2  ;;  %s251_s14 = sshll.u32 %s1049_s13, 4  ;;  %s252_s14 = int_to_ptr.vmem [resolvable:$true] %s251_s14 }
   0xf   : > { %p722_p6 = scmp.ge.s32.totalorder %s1047_s29, 2  ;;  %s1293_s2 = sld [smem:[#allocation17_spill]] }
  0x10   : > { %p751_p4 = pneg %p1138_p3  ;;  %s1050_s19 = smov 256  }
  0x11   : > { %s1051_s20 = smov 16   ;;  %s1052_s21 = smov [#allocation8]  }
  0x12   : > { %p1146_p5 = pnand %p751_p4, %p1130_p1  ;;  %s268_s22 = sshll.u32 %s1052_s21, 4  ;;  %s269_s22 = int_to_ptr.vmem [resolvable:$true] %s268_s22 }
  0x13   : > { %s249_s11 = sshll.u32 %s1290_s1, 4  ;;  %s280_s10 = sshll.u32 %s1282_s3, 4  ;;  %s250_s11 = int_to_ptr.hbm [resolvable:$true] %s249_s11  ;;  %s281_s10 = int_to_ptr.hbm [resolvable:$true] %s280_s10 }
  0x14   : > { %754 = dma.hbm_to_vmem [thread:$0]  (!%p1146_p5), %s250_s11, 4096, %s252_s14, [#allocation7], %s1050_s19, %s1050_s19, %s1051_s20  }
  0x15   : > { %s266_s18 = sshll.u32 %s1293_s2, 4  ;;  %s1053_s13 = smov [#allocation9]   ;;  %s267_s18 = int_to_ptr.hbm [resolvable:$true] %s266_s18 }
  0x16   : > { %757 = dma.hbm_to_vmem [thread:$0]  (!%p1146_p5), %s267_s18, 32, %s269_s22, [#allocation7]  }
  0x17   : > { %s282_s16 = sshll.u32 %s1053_s13, 4  ;;  %s1054_s11 = smov 128   ;;  %s283_s16 = int_to_ptr.vmem [resolvable:$true] %s282_s16 }
  0x18   : > { %s1055_s14 = smov 8   ;;  %s717_s17 = sadd.s32 4294967294, %s1047_s29  }
  0x19   : > { %760 = dma.hbm_to_vmem [thread:$0]  (!%p1146_p5), %s281_s10, 4096, %s283_s16, [#allocation10], %s1054_s11, %s1054_s11, %s1055_s14  }
  0x1a   : > { %s37_s19 = sadd.s32 1, %s1043_s28  ;;  %s44_s20 = sadd.s32 1, %s1035_s26 }
  0x1b   : > { %p39_p7 = scmp.ge.s32.totalorder %s37_s19, 2  ;;  %p51_p8 = scmp.ne.s32.totalorder %s1035_s26, %s1031_s25 }
  0x1c   : > { %p52_p9 = scmp.eq.s32.totalorder %s1047_s29, 0  ;;  %p57_p10 = scmp.ne.s32.totalorder %s1031_s25, %s1027_s24 }
  0x1d   : > { %s1304_s19 = smov (%p39_p7, %s37_s19), 0  ;;  %p222_p13 = scmp.eq.s32.totalorder %s716_s30, 1 }
  0x1e   : > { %p1173_p11 = por %p52_p9, %p51_p8  ;;  %p1179_p12 = por %p1130_p1, %p57_p10 }
  0x1f   : > { %s41_s21 = ssub.s32 %s1043_s28, %s1304_s19  ;;  %p228_p2 = scmp.eq.s32.totalorder %s717_s17, 1 }
  0x20   : > { %p42_p0 = scmp.eq.s32.totalorder %s41_s21, 0  ;;  %p1187_p4 = por %p222_p13, %p51_p8 }
  0x21   : > { %p772_p5 = scmp.lt.s32.totalorder %s1047_s29, 2  ;;  %p1195_p7 = por %p228_p2, %p57_p10 }
  0x22   : > { %s1193_s23 = scalar_select %p42_p0, %s1035_s26, %s44_s20  }
  0x23   : > { %s305_s10 = sand.u32 1, %s1035_s26   ;;  %s724_s16 = sshll.u32 %s1043_s28, 3 }
  0x24   : > { %s723_s13 = sshll.u32 %s305_s10, 3  ;;  %s313_s30 = scalar_lea.hbm %s1279_s0, %s724_s16 }
  0x25   : > { %s309_s21 = scalar_lea.vmem [#allocation3], %s723_s13  ;;  %s315_s1 = sshll.u32 %s313_s30, 4  ;;  %s316_s1 = int_to_ptr.hbm [resolvable:$true] %s315_s1 }
  0x26   : > { %s317_s17 = sshll.u32 %s309_s21, 4  ;;  %p762_p8 = pnand %p772_p5, %p1173_p11  ;;  %s318_s17 = int_to_ptr.vmem [resolvable:$true] %s317_s17 }
  0x27   : > { %s306_s20 = scalar_lea.sflag [#allocation4], %s305_s10  ;;  %326 = sbr.rel (%p1138_p3) target bundleno = 508 (0x1fc), region = 48 }
  0x28   : > { %764 = dma.hbm_to_vmem [thread:$0]  (!%p762_p8), %s316_s1, 128, %s318_s17, %s306_s20  }
  0x29   : > { %s1209_s2 = sand.u32 (!%p1138_p3), 1, %s1031_s25  }
  0x2a   : > { %s726_s16 = sshll.u32 (!%p1138_p3), %s1209_s2, 3  ;;  %s329_s13 = scalar_lea.sflag (!%p1138_p3), [#allocation4], %s1209_s2 }
  0x2b   : > { %s1215_s11 = scalar_lea.vmem (!%p1138_p3), [#allocation3], %s726_s16 }
  0x2c   : > { %1010 = dma.done.wait (%p1179_p12), %s329_s13, 128  }
  0x2d   : > { %1012 = vsyncadd (%p1179_p12), %s329_s13, 4294967168 }
  0x2e   : > { %1014 = dma.done.wait (%p1130_p1), [#allocation7], 4128  }
  0x2f   : > { %1016 = vsyncadd (%p1130_p1), [#allocation7], 4294963168 }
  0x30   : > { %1018 = dma.done.wait (%p1130_p1), [#allocation10], 4096  }
  0x31   : > { %1020 = vsyncadd (%p1130_p1), [#allocation10], 4294963200  ;;  %v419_v0 = vld [vmem:[#allocation6 + $0xf0] sm:$0xff]  ;;  %v420_v1 = vld [vmem:[#allocation6 + $0xf8] sm:$0xff]  ;;  %s732_s12 = sshll.u32 %s1039_s27, 3  ;;  %s378_s27 = scalar_lea.vmem [#allocation11], %s726_s16 }
  0x32   : > { %v417_v2 = vld [vmem:[#allocation6 + $0xe0] sm:$0xff]  ;;  %426 = vmatpush.msra.mxu0 %v419_v0  ;;  %446 = vmatpush.msra.mxu1 %v420_v1  ;;  %v418_v3 = vld [vmem:[#allocation6 + $0xe8] sm:$0xff]  ;;  %v415_v4 = vld [vmem:[#allocation6 + $0xd0] sm:$0xff]  ;;  %s598_s30 = scalar_lea.hbm %s1286_s7, %s732_s12  ;;  %s600_s20 = sshll.u32 %s378_s27, 4  ;;  %s601_s20 = int_to_ptr.vmem [resolvable:$true] %s600_s20 }
  0x33   : > { %v416_v5 = vld [vmem:[#allocation6 + $0xd8] sm:$0xff]  ;;  %v413_v6 = vld [vmem:[#allocation6 + $0xc0] sm:$0xff]  ;;  %v414_v7 = vld [vmem:[#allocation6 + $0xc8] sm:$0xff]  ;;  %s602_s13 = sshll.u32 %s598_s30, 4  ;;  %s977_s15 = scalar_lea.hbm %s1286_s7, 16  ;;  %s603_s13 = int_to_ptr.hbm [resolvable:$true] %s602_s13 }
  0x34   : > { %427 = vmatpush.msra.mxu0 %v417_v2  ;;  %447 = vmatpush.msra.mxu1 %v418_v3  ;;  %v411_v8 = vld [vmem:[#allocation6 + $0xb0] sm:$0xff]  ;;  %v412_v9 = vld [vmem:[#allocation6 + $0xb8] sm:$0xff]  ;;  %v409_v10 = vld [vmem:[#allocation6 + $0xa0] sm:$0xff]  ;;  %s971_s1 = sshra.s32 %s603_s13, 4  ;;  %s972_s1 = int_to_ptr.hbm [resolvable:$true] %s971_s1 }
  0x35   : > { %v410_v11 = vld [vmem:[#allocation6 + $0xa8] sm:$0xff]  ;;  %v407_v12 = vld [vmem:[#allocation6 + $0x90] sm:$0xff]  ;;  %v408_v13 = vld [vmem:[#allocation6 + $0x98] sm:$0xff]  ;;  %s973_s8 = scalar_lea.hbm %s972_s1, 8  ;;  %p978_p10 = scmp.lt.s32.totalorder %s972_s1, %s1286_s7 }
  0x36   : > { %428 = vmatpush.msra.mxu0 %v415_v4  ;;  %448 = vmatpush.msra.mxu1 %v416_v5  ;;  %v484_v14 = vld [vmem:[#allocation9 + $0x78] sm:$0xff]  ;;  %v483_v16 = vld [vmem:[#allocation9 + $0x70] sm:$0xff]  ;;  %v406_v18 = vld [vmem:[#allocation6 + $0x88] sm:$0xff]  ;;  %p974_p1 = scmp.ne.s32.totalorder %s972_s1, %s973_s8  ;;  %p979_p11 = scmp.lt.s32.totalorder %s977_s15, %s973_s8 }
  0x37   : > { %v500_v15 = vld [vmem:[#allocation9 + $0xf8] sm:$0xff]  ;;  %501 = vmatpush.msra.mxu2 %v484_v14  ;;  %v499_v19 = vld [vmem:[#allocation9 + $0xf0] sm:$0xff]  ;;  %v482_v20 = vld [vmem:[#allocation9 + $0x68] sm:$0xff] }
  0x38   : > { %429 = vmatpush.msra.mxu0 %v413_v6  ;;  %449 = vmatpush.msra.mxu1 %v414_v7  ;;  %v405_v17 = vld [vmem:[#allocation6 + $0x80] sm:$0xff]  ;;  %v498_v21 = vld [vmem:[#allocation9 + $0xe8] sm:$0xff]  ;;  %v404_v23 = vld [vmem:[#allocation6 + $0x78] sm:$0xff]  ;;  %p975_p3 = pnand %p974_p1, %p1187_p4  ;;  %p980_p12 = por %p979_p11, %p978_p10 }
  0x39   : > { %521 = vmatpush.msra.mxu3 %v500_v15  ;;  %v403_v22 = vld [vmem:[#allocation6 + $0x70] sm:$0xff]  ;;  %502 = vmatpush.msra.mxu2 %v483_v16  ;;  %v481_v24 = vld [vmem:[#allocation9 + $0x60] sm:$0xff]  ;;  %v480_v28 = vld [vmem:[#allocation9 + $0x58] sm:$0xff] }
  0x3a   : > { %430 = vmatpush.msra.mxu0 %v411_v8  ;;  %450 = vmatpush.msra.mxu1 %v412_v9  ;;  %v497_v25 = vld [vmem:[#allocation9 + $0xe0] sm:$0xff]  ;;  %v496_v29 = vld [vmem:[#allocation9 + $0xd8] sm:$0xff]  ;;  %v399_v30 = vld [vmem:[#allocation6 + $0x50] sm:$0xff]  ;;  %p976_p9 = pneg %p975_p3 }
  0x3b   : > { %522 = vmatpush.msra.mxu3 %v499_v19  ;;  %v401_v26 = vld [vmem:[#allocation6 + $0x60] sm:$0xff]  ;;  %v402_v27 = vld [vmem:[#allocation6 + $0x68] sm:$0xff]  ;;  %503 = vmatpush.msra.mxu2 %v482_v20  ;;  %v400_v31 = vld [vmem:[#allocation6 + $0x58] sm:$0xff] }
  0x3c   : > { %431 = vmatpush.msra.mxu0 %v409_v10  ;;  %451 = vmatpush.msra.mxu1 %v410_v11  ;;  %v397_v32 = vld [vmem:[#allocation6 + $0x40] sm:$0xff]  ;;  %v479_v33 = vld [vmem:[#allocation9 + $0x50] sm:$0xff]  ;;  %v398_v35 = vld [vmem:[#allocation6 + $0x48] sm:$0xff]  ;;  %p981_p13 = pnand %p980_p12, %p976_p9 }
  0x3d   : > { %523 = vmatpush.msra.mxu3 %v498_v21  ;;  %504 = vmatpush.msra.mxu2 %v481_v24  ;;  %v495_v34 = vld [vmem:[#allocation9 + $0xd0] sm:$0xff]  ;;  %v478_v36 = vld [vmem:[#allocation9 + $0x48] sm:$0xff]  ;;  %v477_v40 = vld [vmem:[#allocation9 + $0x40] sm:$0xff] }
  0x3e   : > { %432 = vmatpush.msra.mxu0 %v407_v12  ;;  %452 = vmatpush.msra.mxu1 %v408_v13  ;;  %v494_v37 = vld [vmem:[#allocation9 + $0xc8] sm:$0xff]  ;;  %v396_v39 = vld [vmem:[#allocation6 + $0x38] sm:$0xff]  ;;  %v493_v41 = vld [vmem:[#allocation9 + $0xc0] sm:$0xff] }
  0x3f   : > { %524 = vmatpush.msra.mxu3 %v497_v25  ;;  %505 = vmatpush.msra.mxu2 %v480_v28  ;;  %v395_v38 = vld [vmem:[#allocation6 + $0x30] sm:$0xff]  ;;  %v393_v42 = vld [vmem:[#allocation6 + $0x20] sm:$0xff]  ;;  %v394_v43 = vld [vmem:[#allocation6 + $0x28] sm:$0xff] }
  0x40   : > { %433 = vmatpush.msra.mxu0 %v405_v17  ;;  %453 = vmatpush.msra.mxu1 %v406_v18  ;;  %v476_v44 = vld [vmem:[#allocation9 + $0x38] sm:$0xff]  ;;  %v391_v46 = vld [vmem:[#allocation6 + $0x10] sm:$0xff]  ;;  %v390_v51 = vld [vmem:[#allocation6 + $0x8] sm:$0xff] }
  0x41   : > { %525 = vmatpush.msra.mxu3 %v496_v29  ;;  %506 = vmatpush.msra.mxu2 %v479_v33  ;;  %v492_v45 = vld [vmem:[#allocation9 + $0xb8] sm:$0xff]  ;;  %v475_v48 = vld [vmem:[#allocation9 + $0x30] sm:$0xff]  ;;  %v474_v53 = vld [vmem:[#allocation9 + $0x28] sm:$0xff] }
  0x42   : > { %434 = vmatpush.msra.mxu0 %v403_v22  ;;  %454 = vmatpush.msra.mxu1 %v404_v23  ;;  %v392_v47 = vld [vmem:[#allocation6 + $0x18] sm:$0xff]  ;;  %v389_v50 = vld [vmem:[#allocation6] sm:$0xff]  ;;  %v490_v54 = vld [vmem:[#allocation9 + $0xa8] sm:$0xff] }
  0x43   : > { %526 = vmatpush.msra.mxu3 %v495_v34  ;;  %507 = vmatpush.msra.mxu2 %v478_v36  ;;  %v491_v49 = vld [vmem:[#allocation9 + $0xb0] sm:$0xff]  ;;  %v473_v55 = vld [vmem:[#allocation9 + $0x20] sm:$0xff]  ;;  %v472_v57 = vld [vmem:[#allocation9 + $0x18] sm:$0xff] }
  0x44   : > { %435 = vmatpush.msra.mxu0 %v401_v26  ;;  %455 = vmatpush.msra.mxu1 %v402_v27  ;;  %v387_v52 = vld [vmem:[%s1215_s11] sm:$0xff]  ;;  %v489_v56 = vld [vmem:[#allocation9 + $0xa0] sm:$0xff]  ;;  %v388_v1 = vld [vmem:[#allocation8] sm:$0x3]  ;;  %s588_s11 = scalar_lea.sflag [#allocation5], %s1209_s2 }
  0x45   : > { %527 = vmatpush.msra.mxu3 %v494_v37  ;;  %508 = vmatpush.msra.mxu2 %v477_v40  ;;  %v488_v58 = vld [vmem:[#allocation9 + $0x98] sm:$0xff]  ;;  %v471_v59 = vld [vmem:[#allocation9 + $0x10] sm:$0xff]  ;;  %v470_v61 = vld [vmem:[#allocation9 + $0x8] sm:$0xff]  ;;  %v422_v2 = vperm.slane %v388_v1, 0  ;;  %v423_v3 = vperm.slane %v388_v1, 1 }
  0x46   : > { %436 = vmatpush.msra.mxu0 %v399_v30  ;;  %456 = vmatpush.msra.mxu1 %v400_v31  ;;  %v487_v60 = vld [vmem:[#allocation9 + $0x90] sm:$0xff]  ;;  %v486_v62 = vld [vmem:[#allocation9 + $0x88] sm:$0xff]  ;;  %v469_v63 = vld [vmem:[#allocation9] sm:$0xff] }
  0x47   : > { %528 = vmatpush.msra.mxu3 %v493_v41  ;;  %509 = vmatpush.msra.mxu2 %v476_v44  ;;  %v485_v0 = vld [vmem:[#allocation9 + $0x80] sm:$0xff]  ;;  %v832_v10 = vld [vmem:[%s1283_s4] ss:$0 sm:$0xff] }
  0x48   : > { %437 = vmatpush.msra.mxu0 %v397_v32  ;;  %457 = vmatpush.msra.mxu1 %v398_v35  ;;  %v833_v32 = vld [vmem:[%s1284_s5] ss:$0 sm:$0xff] }
  0x49   : > { %529 = vmatpush.msra.mxu3 %v492_v45  ;;  %510 = vmatpush.msra.mxu2 %v475_v48  ;;  %v834_v35 = vld [vmem:[%s1285_s6] ss:$0 sm:$0xff] }
  0x4a   : > { %438 = vmatpush.msra.mxu0 %v395_v38  ;;  %458 = vmatpush.msra.mxu1 %v396_v39 }
  0x4b   : > { %530 = vmatpush.msra.mxu3 %v491_v49  ;;  %511 = vmatpush.msra.mxu2 %v474_v53 }
  0x4c   : > { %439 = vmatpush.msra.mxu0 %v393_v42  ;;  %459 = vmatpush.msra.mxu1 %v394_v43 }
  0x4d   : > { %531 = vmatpush.msra.mxu3 %v490_v54  ;;  %512 = vmatpush.msra.mxu2 %v473_v55 }
  0x4e   : > { %440 = vmatpush.msra.mxu0 %v391_v46  ;;  %460 = vmatpush.msra.mxu1 %v392_v47 }
  0x4f   : > { %532 = vmatpush.msra.mxu3 %v489_v56  ;;  %513 = vmatpush.msra.mxu2 %v472_v57 }
  0x50   : > { %441 = vmatpush.msra.mxu0 %v389_v50  ;;  %461 = vmatpush.msra.mxu1 %v390_v51 }
  0x51   : > { %442 = vmatmul.f32.vlgmr.msra.gmra.mxu0 %v387_v52  ;;  %462 = vmatmul.f32.vlgmr.msra.gmra.mxu1 %v387_v52 }
  0x52   : > { %533 = vmatpush.msra.mxu3 %v488_v58  ;;  %514 = vmatpush.msra.mxu2 %v471_v59 }
  0x54   : > { %534 = vmatpush.msra.mxu3 %v487_v60  ;;  %515 = vmatpush.msra.mxu2 %v470_v61 }
  0x56   : > { %535 = vmatpush.msra.mxu3 %v486_v62  ;;  %516 = vmatpush.msra.mxu2 %v469_v63 }
  0x58   : > { %536 = vmatpush.msra.mxu3 %v485_v0 }
  0xce   : > { %v443_v4 = vpop.f32.mrf.mxu0  ;;  %v463_v5 = vpop.f32.mrf.mxu1 }
  0xcf   : > { %v444_v6 = vadd.f32 %v443_v4, %v422_v2  ;;  %v464_v7 = vadd.f32 %v463_v5, %v423_v3 }
  0xd1   : > { %v466_v8 = vmax.f32 %v444_v6, 0.0  ;;  %v467_v9 = vmax.f32 %v464_v7, 0.0 }
  0xd3   : > { %517 = vmatmul.f32.vlgmr.msra.gmra.mxu2 %v466_v8  ;;  %537 = vmatmul.f32.vlgmr.msra.gmra.mxu3 %v467_v9 }
 0x156   : > { %v518_v11 = vpop.f32.mrf.mxu2  ;;  %v538_v12 = vpop.f32.mrf.mxu3 }
 0x157   : > { %v539_v13 = vadd.f32 %v538_v12, %v518_v11 }
 0x159   : > { %v553_v14 = vadd.f32 %v832_v10, %v539_v13 }
 0x15b   : > { %v554_v15 = vadd.f32 %v553_v14, %v387_v52 }
 0x15d   : > { %555 = vadd.xlane.f32.xlu0 %v554_v15  ;;  %v558_v16 = vmul.f32 %v554_v15, %v554_v15 }
 0x165   : > { %559 = vadd.xlane.f32.xlu0 %v558_v16 }
 0x1d0   : > { %v556_v17 = vpop.xlane.xlu0 %555 }
 0x1d1   : > { %v557_v18 = vmul.f32 0.03125, %v556_v17 }
 0x1d3   : > { %v562_v20 = vmul.f32 %v557_v18, %v557_v18  ;;  %v565_v31 = vsub.f32 %v554_v15, %v557_v18 }
 0x1d8   : > { %v560_v19 = vpop.xlane.xlu0 %559 }
 0x1d9   : > { %v561_v21 = vmul.f32 0.03125, %v560_v19 }
 0x1db   : > { %v563_v22 = vsub.f32 %v561_v21, %v562_v20 }
 0x1dd   : > { %v564_v23 = vmax.f32 %v563_v22, 0.0 }
 0x1df   : > { %v566_v24 = vadd.f32 1e-05, %v564_v23 }
 0x1e1   : > { %835 = vrsqrt.f32 %v566_v24  ;;  %vm573_vm1 = vweird.f32 %v566_v24 }
 0x1e7   : > { %v836_v25 = vpop.eup %835 }
 0x1e8   : > { %v568_v26 = vmul.f32 %v836_v25, %v566_v24  ;;  %vm574_vm0 = vweird.f32 %v836_v25 }
 0x1e9   : > { %vm575_vm2 = vmor %vm573_vm1, %vm574_vm0 }
 0x1ea   : > { %v569_v27 = vmul.f32 %v836_v25, %v568_v26 }
 0x1ec   : > { %v570_v28 = vmul.f32 0.5, %v569_v27 }
 0x1ee   : > { %v571_v29 = vsub.f32 1.5, %v570_v28 }
 0x1f0   : > { %v572_v30 = vmul.f32 %v836_v25, %v571_v29 }
 0x1f2   : > { %v576_v33 = vsel %vm575_vm2, %v836_v25, %v572_v30 }
 0x1f3   : > { %v577_v34 = vmul.f32 %v576_v33, %v565_v31 }
 0x1f5   : > { %v581_v36 = vmul.f32 %v833_v32, %v577_v34 }
 0x1f7   : > { %v585_v37 = vadd.f32 %v834_v35, %v581_v36 }
 0x1f9   : > { %586 = vst [vmem:[%s378_s27] sm:$0xff] %v585_v37 }
 0x1fa   : > { %984 = shalt.err (!%p981_p13)
}
 0x1fb   : > { %749 = dma.vmem_to_hbm [thread:$0]  (%p1187_p4), %s601_s20, 128, %s603_s13, %s588_s11  }
 0x1fc PF: > { %s614_s2 = sand.u32 1, %s1027_s24   ;;  %p766_p0 = pnand %p722_p6, %p1195_p7 }
 0x1fd   : > { %s615_s14 = scalar_lea.sflag [#allocation5], %s614_s2 }
 0x1fe   : > { %p767_p2 = pneg %p766_p0 }
 0x200   : > { %1022 = dma.done.wait (%p767_p2), %s615_s14, 128  }
 0x201   : > { %1024 = vsyncadd (%p767_p2), %s615_s14, 4294967168  ;;  %s25_s29 = sadd.s32 1, %s1047_s29   ;;  %s1298_s24 = smov %s1031_s25 }
 0x202   : > { %p22_p5 = scmp.ge.s32.totalorder %s25_s29, 4   ;;  %s1299_s25 = smov %s1035_s26 }
 0x203   : > { %s1300_s26 = smov %s1193_s23  ;;  %s1301_s27 = smov %s1043_s28 }
 0x204   : > { %s1302_s28 = smov %s1304_s19  ;;  %24 = sbr.rel (!%p22_p5) target bundleno = 11 (0xb), region = 116 }
 0x209   :  { %621 = vsyncpa [#allocation4], 1 }
 0x20a   :  { %623 = vsyncpa [#allocation4 + $0x1], 1 }
 0x20b   :  { %624 = vsyncpa [#allocation7], 1 }
 0x20c   :  { %625 = vsyncpa [#allocation10], 1 }
 0x20d   :  { %626 = vsyncpa [#allocation5], 1 }
 0x20e   :  { %628 = vsyncpa [#allocation5 + $0x1], 1 }

</bundles_post_ra>
